<compile_context>
chip_gen: v6e
topology: v6e:2x2x1
jax: 0.10.0
libtpu: 0.0.40
codegen_flags: <defaults>
</compile_context>

<pallas_src>
import functools

import jax
import jax.numpy as jnp
from jax.experimental import pallas as pl
from jax.experimental.pallas import tpu as pltpu

# Target bytes of data per channel per grid step (1 MiB -> ~14 MiB in+out
# double-buffered; safe on v5e/v6e (128 MiB VMEM) and v7x (64 MiB VMEM)).
_TARGET_TILE_BYTES_PER_CHANNEL = 1 << 20
_VMEM_LIMIT_BYTES = 40 * 1024 * 1024
# Aim for at least this many grid steps so v7x's two TensorCores both get work.
_MIN_GRID_STEPS = 4


def _bgr_to_rgba_kernel(x_ref, o_ref, *, alpha: float):
    # x_ref: (bt, 3, th, tw) VMEM tile; o_ref: (bt, 4, th, tw) VMEM tile.
    ndim = len(o_ref.shape)
    rest = (slice(None),) * (ndim - 2)
    # Direct slice stores: copy the three input channels, then splat alpha.
    o_ref[(slice(None), slice(0, 3)) + rest] = x_ref[...]
    alpha_shape = (o_ref.shape[0], 1) + tuple(o_ref.shape[2:])
    o_ref[(slice(None), slice(3, 4)) + rest] = jnp.full(
        alpha_shape, alpha, dtype=o_ref.dtype
    )


def _choose_tiles(n: int, rows: int, lanes: int, itemsize: int,
                  extra_steps: int = 1):
    """Pick (batch_tile, row_tile) so a per-channel tile is ~1 MiB.

    `row_tile` is the full `rows` extent when small, otherwise a multiple of
    32 (or 8 when lane tiles are very wide) so sublane packing stays dense for
    32/16/8-bit dtypes.  Tiles are then split (batch axis first) until the
    grid has >= _MIN_GRID_STEPS steps (megacore sharding on v7x).
    """
    target_elems = max(1, _TARGET_TILE_BYTES_PER_CHANNEL // itemsize)
    row_budget = max(1, target_elems // max(1, lanes))  # rows*batch per step

    if rows <= 32:
        ts = rows  # full-extent block is always legal
    elif row_budget >= 32:
        ts = max(32, min(rows, row_budget) // 32 * 32)
    else:
        # Very wide lane tiles: fall back to 8-row granularity to stay on
        # budget (still satisfies the (8, 128) divisibility rule).
        ts = max(8, min(rows, row_budget) // 8 * 8)

    bt = min(n, max(1, row_budget // max(1, ts)))

    def steps(bt_, ts_):
        return pl.cdiv(n, bt_) * pl.cdiv(rows, ts_) * extra_steps

    while steps(bt, ts) < _MIN_GRID_STEPS:
        if bt > 1:
            bt = (bt + 1) // 2
        elif ts >= 64:
            ts = max(32, ((ts + 1) // 2 + 31) // 32 * 32)
        else:
            break
    return bt, ts


def bgr_to_rgba(image: jax.Array, alpha_val: float) -> jax.Array:
    """Pallas TPU implementation of BgrToRgba(alpha_val).forward(image).

    image: (*, 3, H, W)  ->  returns (*, 4, H, W)
    """
    if image.ndim < 3 or image.shape[-3] != 3:
        raise ValueError(
            f"Input size must have a shape of (*, 3, H, W). Got {image.shape}"
        )
    if not isinstance(alpha_val, (int, float)):
        # TODO(synk): tensor-valued alpha (shape (*,1,H,W)) not implemented in
        # the Pallas path; only float alpha is supported here.
        raise TypeError(f"alpha_val must be a float. Got {type(alpha_val)}")

    *batch, _, h, w = image.shape
    n = 1
    for d in batch:
        n *= d
    l = h * w
    dtype = image.dtype
    itemsize = dtype.itemsize

    if n == 0 or l == 0:
        return jnp.zeros(tuple(batch) + (4, h, w), dtype)

    kernel = functools.partial(_bgr_to_rgba_kernel, alpha=float(alpha_val))

    if l % 128 == 0:
        # Lane-dense path: spatial -> (rows, 128); tile rows (sublanes) and
        # batch so each step moves ~1 MiB per channel.
        rows = l // 128
        bt, ts = _choose_tiles(n, rows, 128, itemsize)
        x = image.reshape(n, 3, rows, 128)
        grid = (pl.cdiv(n, bt), pl.cdiv(rows, ts))
        in_specs = [pl.BlockSpec((bt, 3, ts, 128), lambda b, s: (b, 0, s, 0))]
        out_specs = pl.BlockSpec((bt, 4, ts, 128), lambda b, s: (b, 0, s, 0))
        out_shape = jax.ShapeDtypeStruct((n, 4, rows, 128), dtype)
    else:
        # Fallback: keep the natural (n, 3, H, W) layout.  Lanes = W (full
        # extent, or 128-multiples when W is huge); sublanes = H tiles.
        sub_est = h if h <= 32 else 8
        if w <= 128 or sub_est * w * itemsize <= _TARGET_TILE_BYTES_PER_CHANNEL:
            tw = w
        else:
            tw = max(
                128,
                (_TARGET_TILE_BYTES_PER_CHANNEL // (sub_est * itemsize))
                // 128 * 128,
            )
        w_steps = pl.cdiv(w, tw)
        bt, th = _choose_tiles(n, h, tw, itemsize, extra_steps=w_steps)
        x = image.reshape(n, 3, h, w)
        grid = (pl.cdiv(n, bt), pl.cdiv(h, th), w_steps)
        in_specs = [pl.BlockSpec((bt, 3, th, tw), lambda b, i, j: (b, 0, i, j))]
        out_specs = pl.BlockSpec((bt, 4, th, tw), lambda b, i, j: (b, 0, i, j))
        out_shape = jax.ShapeDtypeStruct((n, 4, h, w), dtype)

    out = pl.pallas_call(
        kernel,
        out_shape=out_shape,
        grid_spec=pltpu.PrefetchScalarGridSpec(
            num_scalar_prefetch=0,
            grid=grid,
            in_specs=in_specs,
            out_specs=out_specs,
        ),
        compiler_params=pltpu.CompilerParams(
            dimension_semantics=("parallel",) * len(grid),
            vmem_limit_bytes=_VMEM_LIMIT_BYTES,
        ),
        cost_estimate=pl.CostEstimate(
            flops=0,
            transcendentals=0,
            bytes_accessed=int((3 + 4) * n * l * itemsize),
        ),
    )(x)

    return out.reshape(tuple(batch) + (4, h, w))


class BgrToRgba:
    """Mirror of the PyTorch module: stores alpha_val, forward adds alpha channel."""

    def __init__(self, alpha_val: float) -> None:
        self.alpha_val = alpha_val

    def __call__(self, image: jax.Array) -> jax.Array:
        return bgr_to_rgba(image, self.alpha_val)


def _reference(x: jax.Array, alpha: float) -> jax.Array:
    a = jnp.full(x.shape[:-3] + (1,) + x.shape[-2:], alpha, dtype=x.dtype)
    return jnp.concatenate([x, a], axis=-3)


if __name__ == "__main__":
    module = BgrToRgba(1.0)

    # 1) Lane-dense path, small image, batch-blocked grid.
    x1 = jax.random.uniform(jax.random.PRNGKey(0), (2, 3, 16, 16), dtype=jnp.float32)
    out1 = jax.block_until_ready(module(x1))
    assert out1.shape == (2, 4, 16, 16), out1.shape
    assert jnp.allclose(out1, _reference(x1, 1.0)), "mismatch vs reference (path 1)"

    # 2) Fallback path (H*W not divisible by 128), matches the kornia docstring.
    x2 = jax.random.uniform(jax.random.PRNGKey(1), (2, 3, 4, 5), dtype=jnp.float32)
    out2 = jax.block_until_ready(module(x2))
    assert out2.shape == (2, 4, 4, 5), out2.shape
    assert jnp.allclose(out2, _reference(x2, 1.0)), "mismatch vs reference (path 2)"

    # 3) Lane-dense path with a partial (masked) row tile.
    x3 = jax.random.uniform(jax.random.PRNGKey(2), (1, 3, 48, 128), dtype=jnp.float32)
    out3 = jax.block_until_ready(module(x3))
    assert out3.shape == (1, 4, 48, 128), out3.shape
    assert jnp.allclose(out3, _reference(x3, 0.5) * 0 + _reference(x3, 1.0)), \
        "mismatch vs reference (path 3)"

    # 4) Lane-dense path exercising batch blocks (bt > 1).
    x4 = jax.random.uniform(jax.random.PRNGKey(3), (8, 3, 32, 32), dtype=jnp.float32)
    out4 = jax.block_until_ready(module(x4))
    assert out4.shape == (8, 4, 32, 32), out4.shape
    assert jnp.allclose(out4, _reference(x4, 1.0)), "mismatch vs reference (path 4)"

    # 5) Fallback path with a partial sublane tile (H > tile and H % 32 != 0).
    x5 = jax.random.uniform(jax.random.PRNGKey(4), (2, 3, 37, 33), dtype=jnp.float32)
    out5 = jax.block_until_ready(module(x5))
    assert out5.shape == (2, 4, 37, 33), out5.shape
    assert jnp.allclose(out5, _reference(x5, 1.0)), "mismatch vs reference (path 5)"

    print("KERNEL_OK")
</pallas_src>

<mosaic_0001>
module attributes {stable_mosaic.version = 11 : i64} {
  func.func @_bgr_to_rgba_kernel(%arg0: i32, %arg1: i32, %arg2: memref<1x3x2x128xf32, #tpu.memory_space<vmem>>, %arg3: memref<1x4x2x128xf32, #tpu.memory_space<vmem>>) attributes {dimension_semantics = [#tpu.dimension_semantics<parallel>, #tpu.dimension_semantics<parallel>], iteration_bounds = array<i64: 2, 1>, scalar_prefetch = 0 : i64, scratch_operands = 0 : i64, tpu.core_type = #tpu.core_type<tc>, window_params = [{transform_indices = @transform_0, window_bounds = array<i64: 1, 3, 2, 128>}, {transform_indices = @transform_1, window_bounds = array<i64: 1, 4, 2, 128>}]} {
    %c0 = arith.constant 0 : index
    %c0_0 = arith.constant 0 : index
    %c0_1 = arith.constant 0 : index
    %c0_2 = arith.constant 0 : index
    %0 = vector.load %arg2[%c0, %c0_0, %c0_1, %c0_2] : memref<1x3x2x128xf32, #tpu.memory_space<vmem>>, vector<1x3x2x128xf32>
    %c0_3 = arith.constant 0 : index
    %c0_4 = arith.constant 0 : index
    %c0_5 = arith.constant 0 : index
    %c0_6 = arith.constant 0 : index
    %1 = vector.load %arg3[%c0_3, %c0_4, %c0_5, %c0_6] : memref<1x4x2x128xf32, #tpu.memory_space<vmem>>, vector<1x3x2x128xf32>
    tpu.vector_store %arg3[%c0_3, %c0_4, %c0_5, %c0_6], %0 {strides = array<i32>} : memref<1x4x2x128xf32, #tpu.memory_space<vmem>>, vector<1x3x2x128xf32>,
    %cst = arith.constant 1.000000e+00 : f32
    %2 = vector.broadcast %cst : f32 to vector<1x1x2x128xf32>
    %c0_7 = arith.constant 0 : index
    %c3 = arith.constant 3 : index
    %c0_8 = arith.constant 0 : index
    %c0_9 = arith.constant 0 : index
    %3 = vector.load %arg3[%c0_7, %c3, %c0_8, %c0_9] : memref<1x4x2x128xf32, #tpu.memory_space<vmem>>, vector<1x1x2x128xf32>
    tpu.vector_store %arg3[%c0_7, %c3, %c0_8, %c0_9], %2 {strides = array<i32>} : memref<1x4x2x128xf32, #tpu.memory_space<vmem>>, vector<1x1x2x128xf32>,
    return
  }
  func.func @transform_0(%arg0: i32, %arg1: i32) -> (i32, i32, i32, i32) {
    %c0_i32 = arith.constant 0 : i32
    %c0_i32_0 = arith.constant 0 : i32
    %c0_i32_1 = arith.constant 0 : i32
    return %arg0, %c0_i32, %arg1, %c0_i32_0 : i32, i32, i32, i32
  }
  func.func @transform_1(%arg0: i32, %arg1: i32) -> (i32, i32, i32, i32) {
    %c0_i32 = arith.constant 0 : i32
    %c0_i32_0 = arith.constant 0 : i32
    %c0_i32_1 = arith.constant 0 : i32
    return %arg0, %c0_i32, %arg1, %c0_i32_0 : i32, i32, i32, i32
  }
}

</mosaic_0001>

<bundles_post_ra>
// kernel: tpu_custom_call.1
= control target key start
LH: loop header
LB: loop body
LE: loop exit
PB: predicated region body
PF: predicated region fallthrough
CT: control target
= control target key end

     0   :  { %6 = vsyncpa [#allocation3], 0  ;;  %s618_s0 = inlined_call_operand.hbm [shape: f32[2,3,2,128], index: 0, kind: input, shape index: {}]   ;;  %s619_s1 = inlined_call_operand.hbm [shape: f32[2,4,2,128], index: 1, kind: output, shape index: {}]  }
   0x1   :  { %8 = vsyncpa [#allocation3 + $0x1], 0 }
   0x2   :  { %9 = vsyncpa [#allocation4], 0 }
   0x3   :  { %11 = vsyncpa [#allocation4 + $0x1], 0  ;;  %s471_s6 = smov 0   ;;  %s473_s7 = smov 0  }
   0x4   :  { %s475_s8 = smov 0   ;;  %s477_s9 = smov 0  }
   0x5   :  { %s479_s10 = smov 0   ;;  %s481_s11 = smov 0  }
   0x6 LB: > { %s260_s12 = sadd.s32 4294967295, %s452_s11   ;;  %s261_s13 = sadd.s32 4294967294, %s452_s11   ;;  %s452_s11 = sphi %s481_s11, %s17_s11   ;;  %s448_s10 = sphi %s479_s10, %s630_s10   ;;  %s444_s9 = sphi %s477_s9, %s629_s9   ;;  %s440_s8 = sphi %s475_s8, %s628_s8   ;;  %s436_s7 = sphi %s473_s7, %s627_s7   ;;  %s432_s6 = sphi %s471_s6, %s626_s6  }
   0x7   : > { %s29_s14 = sadd.s32 1, %s448_s10  ;;  %s38_s15 = sadd.s32 1, %s440_s8 }
   0x8   : > { %p31_p0 = scmp.ge.s32.totalorder %s29_s14, 2  ;;  %p45_p1 = scmp.ne.s32.totalorder %s440_s8, %s436_s7 }
   0x9   : > { %p46_p2 = scmp.eq.s32.totalorder %s452_s11, 0  ;;  %p51_p3 = scmp.ne.s32.totalorder %s436_s7, %s432_s6 }
   0xa   : > { %s632_s14 = smov (%p31_p0, %s29_s14), 0  ;;  %p52_p5 = scmp.eq.s32.totalorder %s260_s12, 0 }
   0xb   : > { %p512_p4 = por %p46_p2, %p45_p1  ;;  %s33_s17 = ssub.s32 %s448_s10, %s632_s14 }
   0xc   : > { %p77_p6 = scmp.eq.s32.totalorder %s260_s12, 1  ;;  %p36_p7 = scmp.eq.s32.totalorder %s33_s17, 0 }
   0xd   : > { %p518_p8 = por %p52_p5, %p51_p3  ;;  %p83_p10 = scmp.eq.s32.totalorder %s261_s13, 1 }
   0xe   : > { %p522_p9 = por %p77_p6, %p45_p1  ;;  %p289_p13 = scmp.lt.s32.totalorder %s452_s11, 2 }
   0xf   : > { %s527_s20 = scalar_select %p36_p7, %s440_s8, %s38_s15  }
  0x10   : > { %p529_p11 = por %p83_p10, %p51_p3  ;;  %s103_s22 = sand.u32 1, %s440_s8  }
  0x11   : > { %s274_s23 = smul.u32 6, %s103_s22  ;;  %p539_p0 = pnand %p289_p13, %p512_p4 }
  0x12   : > { %s275_s24 = smul.u32 96, %s448_s10  ;;  %p265_p1 = scmp.ge.s32.totalorder %s452_s11, 1 }
  0x13   : > { %s107_s29 = scalar_lea.vmem [#allocation2], %s274_s23  ;;  %s104_s2 = scalar_lea.sflag [#allocation3], %s103_s22 }
  0x14   : > { %s114_s28 = scalar_lea.hbm %s618_s0, %s275_s24  ;;  %s115_s30 = sshll.u32 %s107_s29, 4  ;;  %s116_s30 = int_to_ptr.vmem [resolvable:$true] %s115_s30 }
  0x15   : > { %p346_p2 = pneg %p539_p0  ;;  %s357_s3 = scalar_lea.vmem %s116_s30, 96 }
  0x16   : > { %p358_p3 = scmp.ne.s32.totalorder %s116_s30, %s357_s3  ;;  %s454_s4 = smov [#allocation2]  }
  0x17   : > { %s362_s5 = sshll.u32 %s454_s4, 4  ;;  %s363_s5 = int_to_ptr.vmem [resolvable:$false] %s362_s5 }
  0x18   : > { %p360_p5 = pnand %p358_p3, %p346_p2  ;;  %s364_s12 = scalar_lea.vmem %s363_s5, 192 }
  0x19   : > { %p365_p4 = scmp.lt.s32.totalorder %s116_s30, %s363_s5  ;;  %p366_p7 = scmp.lt.s32.totalorder %s364_s12, %s357_s3 }
  0x1a   : > { %p361_p6 = pneg %p360_p5 }
  0x1b   : > { %p367_p10 = por %p366_p7, %p365_p4 }
  0x1d   : > { %p368_p13 = pnand %p367_p10, %p361_p6 }
  0x1f   : > { %371 = shalt.err (!%p368_p13)
}
  0x20   : > { %s455_s13 = smov 32   ;;  %s456_s15 = smov 2  }
  0x21   : > { %284 = dma.hbm_to_vmem [thread:$0]  (!%p539_p0), %s114_s28, 96, %s116_s30, %s104_s2, %s455_s13, %s455_s13, %s456_s15  }
  0x22   : > { %p123_p12 = scmp.lt.s32.totalorder %s452_s11, 3 }
  0x24   : > { %p124_p2 = pnand %p265_p1, %p123_p12 }
  0x25   : > { %s555_s16 = sand.u32 (!%p124_p2), 1, %s436_s7  }
  0x26   : > { %127 = sbr.rel (%p124_p2) target bundleno = 69 (0x45), region = 24  ;;  %s130_s22 = scalar_lea.sflag (!%p124_p2), [#allocation3], %s555_s16 }
  0x27   : > { %s276_s17 = smul.u32 (!%p124_p2), 6, %s555_s16 }
  0x29   : > { %s133_s23 = scalar_lea.vmem (!%p124_p2), [#allocation2], %s276_s17 }
  0x2b   : > { %423 = dma.done.wait (%p518_p8), %s130_s22, 96  }
  0x2c   : > { %425 = vsyncadd (%p518_p8), %s130_s22, 4294967200  ;;  %s266_s24 = sshll.u32 %s555_s16, 3  ;;  %v457_v0 = vmov 1.0   ;;  %s273_s27 = sshll.u32 %s444_s9, 7  ;;  %v152_v1 = vld [vmem:[%s133_s23] sm:$0xf]  }
  0x2d   : > { %s151_s25 = scalar_lea.vmem [#allocation5], %s266_s24  ;;  %s570_s18 = scalar_lea.hbm %s619_s1, %s273_s27  ;;  %v154_v2 = vld [vmem:[%s133_s23 + $0x4] sm:$0x3] }
  0x2e   : > { %s175_s26 = sshll.u32 %s151_s25, 4  ;;  %267 = vst [vmem:[%s151_s25 + $0x6] sm:$0x3] %v457_v0  ;;  %155 = vst [vmem:[%s151_s25] sm:$0xf] %v152_v1   ;;  %s161_s30 = scalar_lea.sflag [#allocation4], %s555_s16  ;;  %s565_s26 = int_to_ptr.vmem [resolvable:$true] %s175_s26 }
  0x2f   : > { %157 = vst [vmem:[%s151_s25 + $0x4] sm:$0x3] %v154_v2  ;;  %s372_s2 = scalar_lea.vmem %s565_s26, 128  ;;  %s458_s9 = smov [#allocation5]  }
  0x30   : > { %p373_p8 = scmp.ne.s32.totalorder %s565_s26, %s372_s2  ;;  %s376_s3 = sshll.u32 %s458_s9, 4  ;;  %s377_s3 = int_to_ptr.vmem [resolvable:$false] %s376_s3 }
  0x31   : > { %s378_s4 = scalar_lea.vmem %s377_s3, 256  ;;  %p379_p1 = scmp.lt.s32.totalorder %s565_s26, %s377_s3 }
  0x32   : > { %p374_p12 = pnand %p373_p8, %p522_p9  ;;  %p380_p3 = scmp.lt.s32.totalorder %s378_s4, %s372_s2 }
  0x34   : > { %p375_p0 = pneg %p374_p12  ;;  %p381_p5 = por %p380_p3, %p379_p1 }
  0x36   : > { %p382_p6 = pnand %p381_p5, %p375_p0 }
  0x38   : > { %385 = shalt.err (!%p382_p6)
}
  0x39   : > { %s386_s5 = scalar_lea.hbm %s570_s18, 128  ;;  %s390_s15 = scalar_lea.hbm %s619_s1, 256 }
  0x3a   : > { %p387_p4 = scmp.ne.s32.totalorder %s570_s18, %s386_s5  ;;  %p391_p13 = scmp.lt.s32.totalorder %s570_s18, %s619_s1 }
  0x3b   : > { %p392_p2 = scmp.lt.s32.totalorder %s390_s15, %s386_s5 }
  0x3c   : > { %p388_p7 = pnand %p387_p4, %p522_p9 }
  0x3d   : > { %p393_p8 = por %p392_p2, %p391_p13 }
  0x3e   : > { %p389_p10 = pneg %p388_p7 }
  0x40   : > { %p394_p12 = pnand %p393_p8, %p389_p10 }
  0x42   : > { %397 = shalt.err (!%p394_p12)
}
  0x43   : > { %s459_s23 = smov 32   ;;  %s460_s24 = smov 2  }
  0x44   : > { %279 = dma.vmem_to_hbm [thread:$0]  (%p522_p9), %s565_s26, 128, %s570_s18, %s161_s30, %s459_s23, %s459_s23, %s460_s24  }
  0x45 PF: > { %s190_s25 = sand.u32 1, %s432_s6   ;;  %p625_p0 = scmp.ge.s32.totalorder %s452_s11, 2 }
  0x46   : > { %s191_s27 = scalar_lea.sflag [#allocation4], %s190_s25 }
  0x47   : > { %p286_p1 = pnand %p625_p0, %p529_p11 }
  0x49   : > { %p287_p3 = pneg %p286_p1 }
  0x4b   : > { %427 = dma.done.wait (%p287_p3), %s191_s27, 128  }
  0x4c   : > { %429 = vsyncadd (%p287_p3), %s191_s27, 4294967168  ;;  %s17_s11 = sadd.s32 1, %s452_s11   ;;  %s626_s6 = smov %s436_s7 }
  0x4d   : > { %p14_p5 = scmp.ge.s32.totalorder %s17_s11, 4   ;;  %s627_s7 = smov %s440_s8 }
  0x4e   : > { %s628_s8 = smov %s527_s20  ;;  %s629_s9 = smov %s448_s10 }
  0x4f   : > { %s630_s10 = smov %s632_s14  ;;  %16 = sbr.rel (!%p14_p5) target bundleno = 6 (0x6), region = 70 }
  0x54   :  { %196 = vsyncpa [#allocation3], 1 }
  0x55   :  { %198 = vsyncpa [#allocation3 + $0x1], 1 }
  0x56   :  { %199 = vsyncpa [#allocation4], 1 }
  0x57   :  { %201 = vsyncpa [#allocation4 + $0x1], 1 }

</bundles_post_ra>
